<compile_context>
chip_gen: v7x
topology: tpu7x:2x2x1
jax: 0.10.0
libtpu: 0.0.40
codegen_flags: <defaults>
</compile_context>

<pallas_src>
import jax
import jax.numpy as jnp
from jax.experimental import pallas as pl
from jax.experimental.pallas import tpu as pltpu


# ------------------------------- kernels ------------------------------------

def _make_direct_kernel(tn, compute_dtype):
    """Direct-layout kernel for lane-dense planes (W >= 128 and OW >= 128).

    Block layouts per grid step:
      wh_ref  : (OH, H)       row-resampling weights (compute dtype)
      wwt_ref : (W, OW)       column-resampling weights, already transposed
      x_ref   : (TN, H, W)    original f32 layout straight from HBM
      o_ref   : (TN, OH, OW)  original layout output
    The f32 -> compute_dtype cast happens in-kernel (no wrapper cast pass).
    """
    def kernel(wh_ref, wwt_ref, x_ref, o_ref):
        wh = wh_ref[...]
        wwt = wwt_ref[...]
        for i in range(tn):                      # static unroll; tn kept small
            xi = x_ref[i].astype(compute_dtype)                       # (H, W)
            tmp = jnp.dot(wh, xi, preferred_element_type=jnp.float32)  # (OH, W)
            tmp = tmp.astype(compute_dtype)
            o_ref[i] = jnp.dot(
                tmp, wwt, preferred_element_type=jnp.float32
            ).astype(o_ref.dtype)                                     # (OH, OW)
    return kernel


def _make_lane_merged_kernel(n_groups, tg, w, ow):
    """Lane-merged kernel for small planes (min(W, OW) < 128).

    Block layouts per grid step (TN = n_groups * tg planes):
      wh_ref : (OH, H)         row-resampling weights
      bd_ref : (tg*W, tg*OW)   kron(I_tg, Ww^T) column-resampling weights
      x_ref  : (1, H, TN*W)    plane index merged into the lane dimension
      o_ref  : (1, OH, TN*OW)  lane-dense output slab
    The row pass is fused into the per-group loop so the live intermediate is
    only (OH, tg*W).
    """
    def kernel(wh_ref, bd_ref, x_ref, o_ref):
        wh = wh_ref[...]
        bd = bd_ref[...]
        for g in range(n_groups):
            xg = x_ref[0, :, g * tg * w:(g + 1) * tg * w]          # (H, tg*W)
            tmp = jnp.dot(wh, xg, preferred_element_type=jnp.float32)
            tmp = tmp.astype(xg.dtype)                             # (OH, tg*W)
            o_ref[0, :, g * tg * ow:(g + 1) * tg * ow] = jnp.dot(
                tmp, bd, preferred_element_type=jnp.float32
            ).astype(o_ref.dtype)                                  # (OH, tg*OW)
    return kernel


# --------------------------- batching heuristics -----------------------------

def _vmem_config():
    """Generation-aware (budget, vmem_limit) in bytes.

    v5e/v6e have 128 MiB VMEM -> use a large budget; v7x has 64 MiB -> keep the
    conservative 20 MiB budget / 32 MiB limit.
    """
    try:
        cap = int(pltpu.get_tpu_info().vmem_capacity_bytes)
    except Exception:
        cap = 64 * 1024 * 1024          # unknown: assume the small-VMEM case
    if cap >= 100 * 1024 * 1024:        # v5e / v6e
        return 48 * 1024 * 1024, 96 * 1024 * 1024
    return 20 * 1024 * 1024, 32 * 1024 * 1024   # v7x-safe


def _choose_tg(n, w, ow):
    """Planes per column-pass group for the lane-merged path.

    Target >= 128 lanes on both the input (tg*W) and output (tg*OW) side and,
    when cheap (tg <= 4x the minimum), make BOTH multiples of 128 so the group
    stores are lane-aligned unmasked vst.  tg is not grown beyond that: the
    kron trick wastes MXU MACs proportionally to tg and the kernel is HBM-bound.
    """
    base = max(1, pl.cdiv(128, max(1, min(w, ow))))
    tg = base
    for cand in range(base, min(64, 4 * base) + 1):
        if (cand * w) % 128 == 0 and (cand * ow) % 128 == 0:
            tg = cand
            break
    if tg > n:                      # tiny plane count: don't pad planes for lanes
        tg = max(1, min(base, n))
    return tg


def _pick_tn(n, tg, per_plane_bytes, fixed_bytes, budget, tn_cap):
    """Planes per grid step.

    Preference order: (1) fits the VMEM budget, (2) no zero-padding of the
    plane axis (avoids an extra HBM pass), (3) even grid-step count when there
    is enough work (v7x shards the parallel axis over 2 TensorCores),
    (4) fewest grid steps (~0.35 us per-step overhead).
    """
    headroom = max(0, budget - fixed_bytes)
    tn_max = max(tg, min(tn_cap, headroom // max(1, per_plane_bytes)))
    tn_max = max(tg, (tn_max // tg) * tg)
    want_multi = n >= 2 * tg
    best, best_key = tg, None
    for tn in range(tg, tn_max + 1, tg):
        nt = pl.cdiv(n, tn)
        pad = nt * tn - n
        odd = 0 if (nt % 2 == 0 or not want_multi) else 1
        key = (pad, odd, nt)
        if best_key is None or key < best_key:
            best, best_key = tn, key
    return best


def _pad_planes(x, n_pad):
    n = x.shape[0]
    if n_pad == n:
        return x
    return jnp.pad(x, ((0, n_pad - n), (0, 0), (0, 0)))


# ------------------------------ pallas wrappers ------------------------------

def _resize_direct(x, wh, ww, compute_dtype):
    """Lane-dense planes: x (N,H,W) f32 kept in its original layout."""
    n, h, w = x.shape
    oh, ow = wh.shape[0], ww.shape[0]
    out_dtype = x.dtype
    ci = jnp.dtype(compute_dtype).itemsize
    oi = jnp.dtype(out_dtype).itemsize
    budget, vmem_limit = _vmem_config()

    per_plane = (h * w * x.dtype.itemsize * 2     # input block, double-buffered
                 + oh * ow * oi * 2               # output block, double-buffered
                 + oh * max(w, ow) * 4)           # live per-plane intermediates
    fixed = oh * h * ci * 2 + w * ow * ci * 2     # weight blocks
    tn = _pick_tn(n, 1, per_plane, fixed, budget, tn_cap=16)
    nt = pl.cdiv(n, tn)
    x = _pad_planes(x, nt * tn)

    wh_c = wh.astype(compute_dtype)
    wwt_c = ww.T.astype(compute_dtype)

    flops = 2 * nt * tn * (oh * h * w + oh * w * ow)
    bytes_accessed = (x.size * x.dtype.itemsize + wh_c.size * ci
                      + wwt_c.size * ci + nt * tn * oh * ow * oi)

    out = pl.pallas_call(
        _make_direct_kernel(tn, compute_dtype),
        out_shape=jax.ShapeDtypeStruct((nt * tn, oh, ow), out_dtype),
        grid_spec=pltpu.PrefetchScalarGridSpec(
            num_scalar_prefetch=0,
            grid=(nt,),
            in_specs=[
                # Weights are grid-invariant (constant index_map) -> not re-DMA'd.
                pl.BlockSpec((oh, h), lambda t: (0, 0)),
                pl.BlockSpec((w, ow), lambda t: (0, 0)),
                pl.BlockSpec((tn, h, w), lambda t: (t, 0, 0)),
            ],
            out_specs=pl.BlockSpec((tn, oh, ow), lambda t: (t, 0, 0)),
        ),
        compiler_params=pltpu.CompilerParams(
            dimension_semantics=("parallel",),
            vmem_limit_bytes=int(vmem_limit),
        ),
        cost_estimate=pl.CostEstimate(
            flops=int(flops), transcendentals=0,
            bytes_accessed=int(bytes_accessed)),
    )(wh_c, wwt_c, x)
    return out[:n]


def _resize_lane_merged(x, wh, ww, compute_dtype):
    """Small planes: merge the plane batch into the lane dimension."""
    n, h, w = x.shape
    oh, ow = wh.shape[0], ww.shape[0]
    out_dtype = x.dtype
    ci = jnp.dtype(compute_dtype).itemsize
    oi = jnp.dtype(out_dtype).itemsize
    budget, vmem_limit = _vmem_config()

    tg = _choose_tg(n, w, ow)
    per_plane = (h * w * ci * 2          # input block, double-buffered
                 + oh * ow * oi * 2      # output block, double-buffered
                 + oh * w * 4)           # per-group intermediate (amortized)
    fixed = oh * h * ci * 2 + (tg * w) * (tg * ow) * ci * 2
    tn = _pick_tn(n, tg, per_plane, fixed, budget, tn_cap=64)
    n_groups = tn // tg
    nt = pl.cdiv(n, tn)
    n_pad = nt * tn
    x = _pad_planes(x, n_pad)

    # Lane-major batched layout: xt[t, h, i*W + w] = x[t*TN + i, h, w].
    # (Only done for small planes, where this relayout is cheap.)
    xt = (x.reshape(nt, tn, h, w)
           .transpose(0, 2, 1, 3)
           .reshape(nt, h, tn * w)
           .astype(compute_dtype))
    wh_c = wh.astype(compute_dtype)
    bd = jnp.kron(jnp.eye(tg, dtype=jnp.float32), ww.T).astype(compute_dtype)

    flops = 2 * nt * (oh * h * (tn * w) + n_groups * oh * (tg * w) * (tg * ow))
    bytes_accessed = (xt.size * ci + wh_c.size * ci + bd.size * ci
                      + nt * oh * tn * ow * oi)

    out = pl.pallas_call(
        _make_lane_merged_kernel(n_groups, tg, w, ow),
        out_shape=jax.ShapeDtypeStruct((nt, oh, tn * ow), out_dtype),
        grid_spec=pltpu.PrefetchScalarGridSpec(
            num_scalar_prefetch=0,
            grid=(nt,),
            in_specs=[
                pl.BlockSpec((oh, h), lambda t: (0, 0)),
                pl.BlockSpec((tg * w, tg * ow), lambda t: (0, 0)),
                pl.BlockSpec((1, h, tn * w), lambda t: (t, 0, 0)),
            ],
            out_specs=pl.BlockSpec((1, oh, tn * ow), lambda t: (t, 0, 0)),
        ),
        compiler_params=pltpu.CompilerParams(
            dimension_semantics=("parallel",),
            vmem_limit_bytes=int(vmem_limit),
        ),
        cost_estimate=pl.CostEstimate(
            flops=int(flops), transcendentals=0,
            bytes_accessed=int(bytes_accessed)),
    )(wh_c, bd, xt)

    # (nt, OH, TN*OW) -> (N, OH, OW)
    out = (out.reshape(nt, oh, tn, ow)
              .transpose(0, 2, 1, 3)
              .reshape(n_pad, oh, ow))[:n]
    return out


def _pallas_separable_resize(x, wh, ww, *, compute_dtype=jnp.bfloat16):
    """x: (N, H, W); wh: (OH, H); ww: (OW, W)  ->  (N, OH, OW) in x.dtype."""
    _, _, w = x.shape
    ow = ww.shape[0]
    if min(w, ow) >= 128:
        return _resize_direct(x, wh, ww, compute_dtype)
    return _resize_lane_merged(x, wh, ww, compute_dtype)


# --------------------------- weight construction ----------------------------

def _bilinear_aa_weights(in_size, out_size):
    """Torchvision antialias=True bilinear resampling matrix, shape (out, in)."""
    scale = in_size / out_size                       # >1 when downsampling
    invscale = 1.0 / scale if scale >= 1.0 else 1.0  # stretch filter only on downscale
    j = jnp.arange(out_size, dtype=jnp.float32)
    center = scale * (j + 0.5)                       # half-pixel centers
    i = jnp.arange(in_size, dtype=jnp.float32)
    t = (i[None, :] + 0.5 - center[:, None]) * invscale
    w = jnp.maximum(0.0, 1.0 - jnp.abs(t))           # triangle filter
    w = w / jnp.sum(w, axis=1, keepdims=True)        # boundary renormalization
    return w.astype(jnp.float32)


def _nearest_weights(in_size, out_size):
    """Legacy torch 'nearest' as a one-hot gather matrix, shape (out, in)."""
    scale = in_size / out_size
    j = jnp.arange(out_size, dtype=jnp.float32)
    src = jnp.floor(j * scale).astype(jnp.int32)
    src = jnp.clip(src, 0, in_size - 1)
    return jax.nn.one_hot(src, in_size, dtype=jnp.float32)


# ------------------------------- forward ------------------------------------

def resize_forward(image, mask, size):
    """Equivalent of Resize.forward(image, mask, size=size).

    image: (B, C, H, W) float32 (NCHW), mask: (B, Cm, Hm, Wm) float32,
    size: python float scale factor.
    """
    B, C, H, W = image.shape
    OH, OW = int(size * H), int(size * W)

    # image: bilinear + antialias; bf16 MXU inputs, f32 accumulation.
    wh = _bilinear_aa_weights(H, OH)
    ww = _bilinear_aa_weights(W, OW)
    img_out = _pallas_separable_resize(
        image.reshape(B * C, H, W), wh, ww, compute_dtype=jnp.bfloat16,
    ).reshape(B, C, OH, OW)

    # mask: nearest via one-hot gather matmuls in bf16 (single MXU pass,
    # exact for 0/1 binary masks; see TODO for arbitrary-valued masks).
    Bm, Cm, Hm, Wm = mask.shape
    nwh = _nearest_weights(Hm, OH)
    nww = _nearest_weights(Wm, OW)
    mask_out = _pallas_separable_resize(
        mask.reshape(Bm * Cm, Hm, Wm), nwh, nww, compute_dtype=jnp.bfloat16,
    ).reshape(Bm, Cm, OH, OW)

    return img_out, mask_out


if __name__ == "__main__":
    key = jax.random.PRNGKey(0)
    k1, k2, k3, k4, k5, k6 = jax.random.split(key, 6)

    # --- case 1: small upsample (lane-merged path, single full-width store) --
    B, C, H, W = 2, 4, 16, 16
    size = 1.5
    OH, OW = int(size * H), int(size * W)
    image = jax.random.normal(k1, (B, C, H, W), dtype=jnp.float32)
    mask = (jax.random.uniform(k2, (B, 1, H, W)) > 0.5).astype(jnp.float32)

    img_out, mask_out = resize_forward(image, mask, size)
    jax.block_until_ready((img_out, mask_out))

    assert img_out.shape == (B, C, OH, OW)
    assert mask_out.shape == (B, 1, OH, OW)

    wh = _bilinear_aa_weights(H, OH)
    ww = _bilinear_aa_weights(W, OW)
    img_ref = jnp.einsum('oh,nhw,vw->nov', wh,
                         image.reshape(B * C, H, W), ww).reshape(B, C, OH, OW)
    assert float(jnp.max(jnp.abs(img_out - img_ref))) < 5e-2  # bf16 MXU inputs

    rows = jnp.clip(jnp.floor(jnp.arange(OH) * (H / OH)).astype(jnp.int32), 0, H - 1)
    cols = jnp.clip(jnp.floor(jnp.arange(OW) * (W / OW)).astype(jnp.int32), 0, W - 1)
    mask_ref = mask[:, :, rows][:, :, :, cols]
    assert bool(jnp.all(mask_out == mask_ref))
    assert bool(jnp.all((mask_out == 0.0) | (mask_out == 1.0)))

    # --- case 2: downsample, odd plane count (lane-merged, tg=2 128-aligned
    #             groups, multi-group column pass) ---------------------------
    B2, C2, H2, W2 = 2, 5, 128, 128
    size2 = 0.5
    OH2, OW2 = int(size2 * H2), int(size2 * W2)
    image2 = jax.random.normal(k3, (B2, C2, H2, W2), dtype=jnp.float32)
    mask2 = (jax.random.uniform(k4, (B2, 1, H2, W2)) > 0.5).astype(jnp.float32)

    img2, m2 = resize_forward(image2, mask2, size2)
    jax.block_until_ready((img2, m2))

    wh2 = _bilinear_aa_weights(H2, OH2)
    ww2 = _bilinear_aa_weights(W2, OW2)
    ref2 = jnp.einsum('oh,nhw,vw->nov', wh2,
                      image2.reshape(B2 * C2, H2, W2), ww2).reshape(B2, C2, OH2, OW2)
    assert img2.shape == (B2, C2, OH2, OW2)
    assert m2.shape == (B2, 1, OH2, OW2)
    assert float(jnp.max(jnp.abs(img2 - ref2))) < 5e-2
    assert bool(jnp.all((m2 == 0.0) | (m2 == 1.0)))

    # --- case 3: lane-dense upsample (direct path: no wrapper relayout/cast) -
    B3, C3, H3, W3 = 1, 3, 128, 128
    size3 = 1.25
    OH3, OW3 = int(size3 * H3), int(size3 * W3)
    image3 = jax.random.normal(k5, (B3, C3, H3, W3), dtype=jnp.float32)
    mask3 = (jax.random.uniform(k6, (B3, 1, H3, W3)) > 0.5).astype(jnp.float32)

    img3, m3 = resize_forward(image3, mask3, size3)
    jax.block_until_ready((img3, m3))

    wh3 = _bilinear_aa_weights(H3, OH3)
    ww3 = _bilinear_aa_weights(W3, OW3)
    ref3 = jnp.einsum('oh,nhw,vw->nov', wh3,
                      image3.reshape(B3 * C3, H3, W3), ww3).reshape(B3, C3, OH3, OW3)
    rows3 = jnp.clip(jnp.floor(jnp.arange(OH3) * (H3 / OH3)).astype(jnp.int32), 0, H3 - 1)
    cols3 = jnp.clip(jnp.floor(jnp.arange(OW3) * (W3 / OW3)).astype(jnp.int32), 0, W3 - 1)
    m3_ref = mask3[:, :, rows3][:, :, :, cols3]
    assert img3.shape == (B3, C3, OH3, OW3)
    assert m3.shape == (B3, 1, OH3, OW3)
    assert float(jnp.max(jnp.abs(img3 - ref3))) < 5e-2
    assert bool(jnp.all(m3 == m3_ref))
    assert bool(jnp.all((m3 == 0.0) | (m3 == 1.0)))

    print("KERNEL_OK")
</pallas_src>

<mosaic_0001>
module attributes {stable_mosaic.version = 11 : i64} {
  func.func @kernel(%arg0: i32, %arg1: memref<24x16xbf16, #tpu.memory_space<vmem>>, %arg2: memref<128x192xbf16, #tpu.memory_space<vmem>>, %arg3: memref<1x16x128xbf16, #tpu.memory_space<vmem>>, %arg4: memref<1x24x192xf32, #tpu.memory_space<vmem>>) attributes {dimension_semantics = [#tpu.dimension_semantics<parallel>], iteration_bounds = array<i64: 1>, scalar_prefetch = 0 : i64, scratch_operands = 0 : i64, tpu.core_type = #tpu.core_type<tc>, window_params = [{pipeline_mode = #tpu.pipeline_mode<synchronous>, transform_indices = @transform_0, window_bounds = array<i64: 24, 16>}, {pipeline_mode = #tpu.pipeline_mode<synchronous>, transform_indices = @transform_1, window_bounds = array<i64: 128, 192>}, {transform_indices = @transform_2, window_bounds = array<i64: 1, 16, 128>}, {transform_indices = @transform_3, window_bounds = array<i64: 1, 24, 192>}]} {
    %c0 = arith.constant 0 : index
    %c0_0 = arith.constant 0 : index
    %0 = vector.load %arg1[%c0, %c0_0] : memref<24x16xbf16, #tpu.memory_space<vmem>>, vector<24x16xbf16>
    %c0_1 = arith.constant 0 : index
    %c0_2 = arith.constant 0 : index
    %1 = vector.load %arg2[%c0_1, %c0_2] : memref<128x192xbf16, #tpu.memory_space<vmem>>, vector<128x192xbf16>
    %c0_3 = arith.constant 0 : index
    %c0_4 = arith.constant 0 : index
    %c0_5 = arith.constant 0 : index
    %2 = vector.load %arg3[%c0_3, %c0_4, %c0_5] : memref<1x16x128xbf16, #tpu.memory_space<vmem>>, vector<1x16x128xbf16>
    %3 = vector.shape_cast %2 : vector<1x16x128xbf16> to vector<16x128xbf16>
    %cst = arith.constant dense<0.000000e+00> : vector<24x128xf32>
    %4 = tpu.matmul %0, %3, %cst {dimension_numbers = #tpu.dot_dimension_numbers<[1], [0], [0], [1], [0, 0, 1, 1], [], []>} : vector<24x16xbf16>, vector<16x128xbf16>, vector<24x128xf32> -> vector<24x128xf32>
    %5 = arith.truncf %4 : vector<24x128xf32> to vector<24x128xbf16>
    %cst_6 = arith.constant dense<0.000000e+00> : vector<24x192xf32>
    %6 = tpu.matmul %5, %1, %cst_6 {dimension_numbers = #tpu.dot_dimension_numbers<[1], [0], [0], [1], [0, 0, 1, 1], [], []>} : vector<24x128xbf16>, vector<128x192xbf16>, vector<24x192xf32> -> vector<24x192xf32>
    %c0_7 = arith.constant 0 : index
    %c0_8 = arith.constant 0 : index
    %c0_9 = arith.constant 0 : index
    %7 = vector.load %arg4[%c0_7, %c0_8, %c0_9] : memref<1x24x192xf32, #tpu.memory_space<vmem>>, vector<1x24x192xf32>
    %8 = vector.shape_cast %7 : vector<1x24x192xf32> to vector<24x192xf32>
    %9 = vector.shape_cast %6 : vector<24x192xf32> to vector<1x24x192xf32>
    tpu.vector_store %arg4[%c0_7, %c0_8, %c0_9], %9 {strides = array<i32>} : memref<1x24x192xf32, #tpu.memory_space<vmem>>, vector<1x24x192xf32>,
    return
  }
  func.func @transform_0(%arg0: i32) -> (i32, i32) {
    %c0_i32 = arith.constant 0 : i32
    %c0_i32_0 = arith.constant 0 : i32
    %c0_i32_1 = arith.constant 0 : i32
    return %c0_i32, %c0_i32_0 : i32, i32
  }
  func.func @transform_1(%arg0: i32) -> (i32, i32) {
    %c0_i32 = arith.constant 0 : i32
    %c0_i32_0 = arith.constant 0 : i32
    %c0_i32_1 = arith.constant 0 : i32
    return %c0_i32, %c0_i32_0 : i32, i32
  }
  func.func @transform_2(%arg0: i32) -> (i32, i32, i32) {
    %c0_i32 = arith.constant 0 : i32
    %c0_i32_0 = arith.constant 0 : i32
    %c0_i32_1 = arith.constant 0 : i32
    return %arg0, %c0_i32, %c0_i32_0 : i32, i32, i32
  }
  func.func @transform_3(%arg0: i32) -> (i32, i32, i32) {
    %c0_i32 = arith.constant 0 : i32
    %c0_i32_0 = arith.constant 0 : i32
    %c0_i32_1 = arith.constant 0 : i32
    return %arg0, %c0_i32, %c0_i32_0 : i32, i32, i32
  }
}

</mosaic_0001>

<bundles_post_ra>
// kernel: tpu_custom_call.1
= control target key start
LH: loop header
LB: loop body
LE: loop exit
PB: predicated region body
PF: predicated region fallthrough
CT: control target
= control target key end

     0   :  { %vm51_vm0 = vcmask 130048   ;;  %s459_s0 = inlined_call_operand.vmem [shape: bf16[24,16], index: 0, kind: input, shape index: {}]   ;;  %s460_s1 = inlined_call_operand.vmem [shape: bf16[128,192], index: 1, kind: input, shape index: {}]   ;;  %s461_s2 = inlined_call_operand.vmem [shape: bf16[1,16,128], index: 2, kind: input, shape index: {}]   ;;  %s462_s3 = inlined_call_operand.hbm [shape: f32[1,24,192], index: 3, kind: output, shape index: {}]  }
   0x1   :  { %v312_v0 = vld [vmem:[%s461_s2] sm:$0xff]   ;;  %v314_v2 = vld [vmem:[%s459_s0 + $0x8] ss:$0 sps:$4 sm:$0xff]   ;;  %v318_v5 = vld [vmem:[%s460_s1 + $0x14] ss:$8 sps:$4 sm:$0xff]  }
   0x2   :  { %v313_v1 = vld [vmem:[%s459_s0] sm:$0xff]   ;;  %286 = vmatprep.subr.bf16.mxu0 %v312_v0  ;;  %v320_v6 = vld [vmem:[%s460_s1 + $0x10] ss:$8 sps:$4 sm:$0xff]   ;;  %v324_v9 = vld [vmem:[%s460_s1 + $0x34] ss:$8 sps:$4 sm:$0xff]  }
   0x3   :  { %287 = vmatpush3.bf16.msra.mxu0 %v312_v0  ;;  %288 = vmatprep.mubr.msk.bf16.mxu0 %vm51_vm0, %v313_v1  ;;  %v315_v3 = vld [vmem:[%s460_s1 + $0x4] ss:$8 sps:$4 sm:$0xff]   ;;  %v317_v4 = vld [vmem:[%s460_s1] ss:$8 sps:$4 sm:$0xff]  }
   0x4   :  { %292 = vmatprep.subr.bf16.mxu1 %v315_v3  ;;  %188 = vmatprep.subr.bf16.mxu0 %v315_v3  ;;  %v321_v7 = vld [vmem:[%s460_s1 + $0x24] ss:$8 sps:$4 sm:$0xff]   ;;  %v323_v8 = vld [vmem:[%s460_s1 + $0x20] ss:$8 sps:$4 sm:$0xff]  }
   0x5   :  { %300 = vmatpush1.bf16.msra.mxu1 %v317_v4 }
   0x6   :  { %289 = vmatmul.mubr.msk.bf16.vlgmr.msra.gmra.mrb[0].mxu0 %vm51_vm0, %v314_v2  ;;  %293 = vmatprep.subr.bf16.mxu1 %v318_v5 }
   0x7   :  { %189 = vmatpush1.bf16.msra.mxu0 %v317_v4 }
   0x8   :  { %190 = vmatprep.subr.bf16.mxu0 %v318_v5 }
   0x9   :  { %301 = vmatpush1.bf16.msra.mxu1 %v320_v6 }
   0xa   :  { %294 = vmatprep.subr.bf16.mxu1 %v321_v7 }
   0xb   :  { %191 = vmatpush1.bf16.msra.mxu0 %v320_v6 }
   0xc   :  { %192 = vmatprep.subr.bf16.mxu0 %v321_v7 }
   0xd   :  { %8 = vsyncpa [#allocation3], 0  ;;  %302 = vmatpush1.bf16.msra.mxu1 %v323_v8  ;;  %v326_v10 = vld [vmem:[%s460_s1 + $0x30] ss:$8 sps:$4 sm:$0xff]   ;;  %v327_v11 = vld [vmem:[%s460_s1 + $0x44] ss:$8 sps:$4 sm:$0xff]  }
   0xe   :  { %295 = vmatprep.subr.bf16.mxu1 %v324_v9  ;;  %v329_v12 = vld [vmem:[%s460_s1 + $0x40] ss:$8 sps:$4 sm:$0xff]   ;;  %v330_v13 = vld [vmem:[%s460_s1 + $0x54] ss:$8 sps:$4 sm:$0xff]   ;;  %v332_v14 = vld [vmem:[%s460_s1 + $0x50] ss:$8 sps:$4 sm:$0xff]  }
   0xf   :  { %193 = vmatpush1.bf16.msra.mxu0 %v323_v8  ;;  %v333_v15 = vld [vmem:[%s460_s1 + $0x64] ss:$8 sps:$4 sm:$0xff]   ;;  %v335_v16 = vld [vmem:[%s460_s1 + $0x60] ss:$8 sps:$4 sm:$0xff]   ;;  %v336_v17 = vld [vmem:[%s460_s1 + $0x74] ss:$8 sps:$4 sm:$0xff]  }
  0x10   :  { %194 = vmatprep.subr.bf16.mxu0 %v324_v9  ;;  %v338_v18 = vld [vmem:[%s460_s1 + $0x70] ss:$8 sps:$4 sm:$0xff]   ;;  %v363_v19 = vmov 0   ;;  %vm240_vm1 = vcmask 523264   ;;  %s364_s21 = smov [#allocation2]  }
  0x11   :  { %303 = vmatpush1.bf16.msra.mxu1 %v326_v10  ;;  %230 = vmatprep.mubr.bf16.mxu1 %v363_v19  ;;  %s251_s2 = sshll.u32 %s364_s21, 4  ;;  %s252_s2 = int_to_ptr.vmem [resolvable:$true] %s251_s2 }
  0x12   :  { %296 = vmatprep.subr.bf16.mxu1 %v327_v11  ;;  %220 = vmatprep.mubr.bf16.mxu0 %v363_v19  ;;  %s339_s1 = scalar_lea.vmem %s252_s2, 768  ;;  %p344_p1 = scmp.lt.s32.totalorder %s252_s2, %s252_s2 }
  0x13   :  { %195 = vmatpush1.bf16.msra.mxu0 %v326_v10  ;;  %p340_p0 = scmp.ne.s32.totalorder %s252_s2, %s339_s1  ;;  %p345_p2 = scmp.lt.s32.totalorder %s339_s1, %s339_s1 }
  0x14   :  { %196 = vmatprep.subr.bf16.mxu0 %v327_v11 }
  0x15   :  { %304 = vmatpush1.bf16.msra.mxu1 %v329_v12  ;;  %p346_p3 = por %p345_p2, %p344_p1 }
  0x16   :  { %297 = vmatprep.subr.bf16.mxu1 %v330_v13 }
  0x17   :  { %197 = vmatpush1.bf16.msra.mxu0 %v329_v12  ;;  %p347_p4 = pnand %p346_p3, %p340_p0 }
  0x18   :  { %198 = vmatprep.subr.bf16.mxu0 %v330_v13 }
  0x19   :  { %305 = vmatpush1.bf16.msra.mxu1 %v332_v14 }
  0x1a   :  { %298 = vmatprep.subr.bf16.mxu1 %v333_v15 }
  0x1b   :  { %199 = vmatpush1.bf16.msra.mxu0 %v332_v14 }
  0x1c   :  { %200 = vmatprep.subr.bf16.mxu0 %v333_v15 }
  0x1d   :  { %306 = vmatpush1.bf16.msra.mxu1 %v335_v16 }
  0x1e   :  { %299 = vmatprep.subr.bf16.mxu1 %v336_v17 }
  0x1f   :  { %201 = vmatpush1.bf16.msra.mxu0 %v335_v16 }
  0x20   :  { %202 = vmatprep.subr.bf16.mxu0 %v336_v17 }
  0x21   :  { %307 = vmatpush1.bf16.msra.mxu1 %v338_v18 }
  0x23   :  { %203 = vmatpush1.bf16.msra.mxu0 %v338_v18 }
  0xd9   :  { %v290_v20 = vpop.f32.mrb[0].mxu0 }
  0xda   :  { %v107_v21 = vpack.c.bf16 %v290_v20, %v290_v20  ;;  %v92_v22 = vpop.f32.mrb[1].mxu0 }
  0xdb   :  { %v291_v23 = vpop.f32.mrb[2].mxu0 }
  0xdc   :  { %v95_v24 = vpop.f32.mrb[3].mxu0  ;;  %231 = vmatmul.mubr.bf16.vlgmr.msra.gmra.mrb[0].mxu1 %v107_v21 }
  0xdd   :  { %v106_v25 = vpack.c.bf16 %v95_v24, %v92_v22 }
  0xdf   :  { %221 = vmatmul.mubr.bf16.vlgmr.msra.gmra.mrb[4].mxu0 %v106_v25 }
 0x1af   :  { %v232_v26 = vpop.f32.mrb[0].mxu1 }
 0x1b0   :  { %244 = vst [vmem:[#allocation2 + $0x20] sm:$0xff] %v232_v26  ;;  %v234_v27 = vpop.f32.mrb[1].mxu1 }
 0x1b1   :  { %245 = vst.msk [vmem:[#allocation2 + $0x28] sm:$0xff] %vm240_vm1, %v234_v27  ;;  %v236_v28 = vpop.f32.mrb[2].mxu1 }
 0x1b2   :  { %v222_v29 = vpop.f32.mrb[4].mxu0  ;;  %v237_v30 = vpop.f32.mrb[3].mxu1 }
 0x1b3   :  { %239 = vst [vmem:[#allocation2] sm:$0xff] %v222_v29  ;;  %v224_v31 = vpop.f32.mrb[5].mxu0 }
 0x1b4   :  { %241 = vst.msk [vmem:[#allocation2 + $0x8] sm:$0xff] %vm240_vm1, %v224_v31  ;;  %v226_v32 = vpop.f32.mrb[6].mxu0 }
 0x1b5   :  { %242 = vst [vmem:[#allocation2 + $0x10] sm:$0xff] %v226_v32  ;;  %v228_v33 = vpop.f32.mrb[7].mxu0 }
 0x1b6   :  { %243 = vst.msk [vmem:[#allocation2 + $0x18] sm:$0xff] %vm240_vm1, %v228_v33 }
 0x1b7   :  { %350 = shalt.err (!%p347_p4)
}
 0x1b8   :  { %s351_s0 = scalar_lea.hbm %s462_s3, 768 }
 0x1b9   :  { %p352_p5 = scmp.ne.s32.totalorder %s462_s3, %s351_s0  ;;  %p355_p6 = scmp.lt.u32.totalorder %s351_s0, %s462_s3 }
 0x1bb   :  { %p357_p7 = pnand %p355_p6, %p352_p5 }
 0x1bd   :  { %360 = shalt.err (!%p357_p7)
}
 0x1be   :  { %s365_s28 = smov 256   ;;  %s366_s29 = smov 16  }
 0x1bf   :  { %257 = dma.vmem_to_hbm [thread:$0]  %s252_s2, 768, %s462_s3, [#allocation3], %s365_s28, %s365_s28, %s366_s29  }
 0x1c0   :  { %361 = dma.done.wait [#allocation3], 768  }
 0x1c1   :  { %362 = vsyncadd [#allocation3], 4294966528 }
 0x1c2   :  { %261 = vsyncpa [#allocation3], 1 }

</bundles_post_ra>
